<compile_context>
chip_gen: v6e
topology: v6e:2x2x1
jax: 0.10.0
libtpu: 0.0.40
codegen_flags: <defaults>
</compile_context>

<pallas_src>
import functools

import jax
import jax.numpy as jnp
from jax.experimental import pallas as pl
from jax.experimental.pallas import tpu as pltpu


def _crop_kernel(r_ref, out_ref, *, up, left, h_out, w_out):
    """Copy the statically-offset crop window of the current plane block."""
    out_ref[...] = r_ref[:, pl.ds(up, h_out), pl.ds(left, w_out)]


def _padded_plane_bytes(hh, ww, dtype):
    """VMEM bytes one (hh, ww) plane really occupies after (sublane,128) tiling."""
    itemsize = jnp.dtype(dtype).itemsize
    sub = max(8, 32 // itemsize)          # f32 -> 8, bf16 -> 16, int8 -> 32
    hp = -(-hh // sub) * sub
    wp = -(-ww // 128) * 128
    return hp * wp * itemsize


def relevance_zero_pad(a, r, padding, *, block_planes=None,
                       target_pair_bytes=12 * 1024 * 1024):
    """Pallas equivalent of RelevanceZeroPad.forward.

    a:        activations (unused, kept for signature parity with the module)
    r:        relevance map, shape (N, C, H, W)
    padding:  (left, right, up, down) as stored by nn.ZeroPad2d
    """
    del a  # unused, as in the PyTorch module
    left, right, up, down = (int(p) for p in padding)
    n, c, h, w = r.shape
    h_out = h - up - down
    w_out = w - left - right
    assert left > 0 and right > 0 and up > 0 and down > 0, (
        "RelevanceZeroPad semantics (up:-down, left:-right) need positive pads")
    assert h_out > 0 and w_out > 0, "crop would be empty"

    nc = n * c
    r_flat = r.reshape(nc, h, w)  # contiguous reshape, free
    itemsize = jnp.dtype(r.dtype).itemsize

    # Padded VMEM footprint of one input plane + one output plane.
    pair_bytes = _padded_plane_bytes(h, w, r.dtype) + _padded_plane_bytes(
        h_out, w_out, r.dtype)

    if block_planes is None:
        blk = max(1, min(nc, target_pair_bytes // pair_bytes))
    else:
        blk = max(1, min(nc, int(block_planes)))
    grid = (pl.cdiv(nc, blk),)

    # Double-buffered in+out blocks + headroom for compiler internal scratch.
    vmem_needed = 2 * blk * pair_bytes
    vmem_limit = int(min(max(vmem_needed + (8 << 20), 16 << 20), 48 << 20))

    kernel = functools.partial(
        _crop_kernel, up=up, left=left, h_out=h_out, w_out=w_out)

    bytes_accessed = nc * (h * w + h_out * w_out) * itemsize

    out_flat = pl.pallas_call(
        kernel,
        out_shape=jax.ShapeDtypeStruct((nc, h_out, w_out), r.dtype),
        grid_spec=pltpu.PrefetchScalarGridSpec(
            num_scalar_prefetch=0,
            grid=grid,
            in_specs=[pl.BlockSpec((blk, h, w), lambda i: (i, 0, 0))],
            out_specs=pl.BlockSpec((blk, h_out, w_out), lambda i: (i, 0, 0)),
        ),
        compiler_params=pltpu.CompilerParams(
            dimension_semantics=("parallel",),
            vmem_limit_bytes=vmem_limit,
        ),
        cost_estimate=pl.CostEstimate(
            flops=0, transcendentals=0, bytes_accessed=int(bytes_accessed)),
    )(r_flat)

    return out_flat.reshape(n, c, h_out, w_out)


if __name__ == "__main__":
    key = jax.random.PRNGKey(0)
    k_a, k_r = jax.random.split(key)

    # Primary small demo shape.
    N, C, H, W = 2, 4, 16, 16
    padding = (2, 2, 1, 1)  # (left, right, up, down), all > 0 as the module assumes
    left, right, up, down = padding

    a = jax.random.normal(k_a, (N, C, H, W), dtype=jnp.float32)
    r = jax.random.normal(k_r, (N, C, H, W), dtype=jnp.float32)

    out = jax.block_until_ready(relevance_zero_pad(a, r, padding))
    ref = r[:, :, up:H - down, left:W - right]
    assert out.shape == ref.shape, (out.shape, ref.shape)
    if not bool(jnp.array_equal(out, ref)):
        raise AssertionError("Pallas crop does not match reference slice")

    # Second check: N*C not divisible by the block size -> exercises the
    # cdiv(nc, blk) grid with a partial trailing block.
    N2, C2 = 3, 5  # nc = 15, block_planes = 4 -> grid 4 with a 3-plane tail
    r2 = jax.random.normal(jax.random.PRNGKey(1), (N2, C2, H, W), dtype=jnp.float32)
    a2 = jnp.zeros_like(r2)
    out2 = jax.block_until_ready(
        relevance_zero_pad(a2, r2, padding, block_planes=4))
    ref2 = r2[:, :, up:H - down, left:W - right]
    if not bool(jnp.array_equal(out2, ref2)):
        raise AssertionError("Pallas crop (tail-block case) does not match reference")

    print("KERNEL_OK")
</pallas_src>

<mosaic_0001>
module attributes {stable_mosaic.version = 11 : i64} {
  func.func @_crop_kernel(%arg0: i32, %arg1: memref<8x16x16xf32, #tpu.memory_space<vmem>>, %arg2: memref<8x14x12xf32, #tpu.memory_space<vmem>>) attributes {dimension_semantics = [#tpu.dimension_semantics<parallel>], iteration_bounds = array<i64: 1>, scalar_prefetch = 0 : i64, scratch_operands = 0 : i64, tpu.core_type = #tpu.core_type<tc>, window_params = [{transform_indices = @transform_0, window_bounds = array<i64: 8, 16, 16>}, {transform_indices = @transform_1, window_bounds = array<i64: 8, 14, 12>}]} {
    %c0 = arith.constant 0 : index
    %c1 = arith.constant 1 : index
    %c2 = arith.constant 2 : index
    %0 = vector.load %arg1[%c0, %c1, %c2] : memref<8x16x16xf32, #tpu.memory_space<vmem>>, vector<8x14x12xf32>
    %c0_0 = arith.constant 0 : index
    %c0_1 = arith.constant 0 : index
    %c0_2 = arith.constant 0 : index
    %1 = vector.load %arg2[%c0_0, %c0_1, %c0_2] : memref<8x14x12xf32, #tpu.memory_space<vmem>>, vector<8x14x12xf32>
    tpu.vector_store %arg2[%c0_0, %c0_1, %c0_2], %0 {strides = array<i32>} : memref<8x14x12xf32, #tpu.memory_space<vmem>>, vector<8x14x12xf32>,
    return
  }
  func.func @transform_0(%arg0: i32) -> (i32, i32, i32) {
    %c0_i32 = arith.constant 0 : i32
    %c0_i32_0 = arith.constant 0 : i32
    %c0_i32_1 = arith.constant 0 : i32
    return %arg0, %c0_i32, %c0_i32_0 : i32, i32, i32
  }
  func.func @transform_1(%arg0: i32) -> (i32, i32, i32) {
    %c0_i32 = arith.constant 0 : i32
    %c0_i32_0 = arith.constant 0 : i32
    %c0_i32_1 = arith.constant 0 : i32
    return %arg0, %c0_i32, %c0_i32_0 : i32, i32, i32
  }
}

</mosaic_0001>

<bundles_post_ra>
// kernel: tpu_custom_call.1
= control target key start
LH: loop header
LB: loop body
LE: loop exit
PB: predicated region body
PF: predicated region fallthrough
CT: control target
= control target key end

     0   :  { %6 = vsyncpa [#allocation3], 0  ;;  %s151_s6 = smov [#allocation2]   ;;  %s232_s0 = inlined_call_operand.hbm [shape: f32[8,16,16], index: 0, kind: input, shape index: {}]   ;;  %s233_s1 = inlined_call_operand.vmem [shape: f32[8,14,12], index: 1, kind: output, shape index: {}]  }
   0x1   :  { %s12_s7 = sshll.u32 %s151_s6, 4  ;;  %s13_s7 = int_to_ptr.vmem [resolvable:$true] %s12_s7 }
   0x2   :  { %s137_s8 = scalar_lea.vmem %s13_s7, 2048  ;;  %p142_p1 = scmp.lt.s32.totalorder %s13_s7, %s13_s7 }
   0x3   :  { %p138_p0 = scmp.ne.s32.totalorder %s13_s7, %s137_s8  ;;  %p143_p2 = scmp.lt.s32.totalorder %s137_s8, %s137_s8 }
   0x5   :  { %p144_p3 = por %p143_p2, %p142_p1 }
   0x7   :  { %p145_p4 = pnand %p144_p3, %p138_p0 }
   0x9   :  { %148 = shalt.err (!%p145_p4)
}
   0xa   :  { %s152_s9 = smov 128   ;;  %s153_s10 = smov 8  }
   0xb   :  { %18 = dma.hbm_to_vmem [thread:$0]  %s232_s0, 2048, %s13_s7, [#allocation3], %s152_s9, %s152_s9, %s153_s10  }
   0xc   :  { %149 = dma.done.wait [#allocation3], 2048  }
   0xd   :  { %150 = vsyncadd [#allocation3], 4294965248  ;;  %v24_v0 = vld [vmem:[#allocation2 + $0x11] sm:$0xff]  ;;  %v22_v1 = vld [vmem:[#allocation2 + $0x1] sm:$0xff]  ;;  %s154_s13 = smov 126   ;;  %vm102_vm0 = vcmask 97280  }
   0xe   :  { %58 = vrot.lane.b32.xlu1 %v24_v0, %s154_s13  ;;  %54 = vrot.lane.b32.xlu0 %v22_v1, %s154_s13  ;;  %v25_v2 = vld [vmem:[#allocation2 + $0x19] sm:$0x3f]  ;;  %v23_v3 = vld [vmem:[#allocation2 + $0x9] sm:$0x3f]  ;;  %v26_v5 = vld [vmem:[#allocation2 + $0x21] sm:$0xff]  ;;  %vm104_vm1 = vcmask 95232  }
   0xf   :  { %v27_v4 = vld [vmem:[#allocation2 + $0x29] sm:$0x3f]  ;;  %v29_v6 = vld [vmem:[#allocation2 + $0x39] sm:$0x3f]  ;;  %v28_v7 = vld [vmem:[#allocation2 + $0x31] sm:$0xff] }
  0x10   :  { %v31_v8 = vld [vmem:[#allocation2 + $0x49] sm:$0x3f]  ;;  %v30_v9 = vld [vmem:[#allocation2 + $0x41] sm:$0xff]  ;;  %v33_v10 = vld [vmem:[#allocation2 + $0x59] sm:$0x3f] }
  0x11   :  { %v32_v11 = vld [vmem:[#allocation2 + $0x51] sm:$0xff]  ;;  %v35_v12 = vld [vmem:[#allocation2 + $0x69] sm:$0x3f]  ;;  %v34_v13 = vld [vmem:[#allocation2 + $0x61] sm:$0xff] }
  0x12   :  { %60 = vrot.lane.b32.xlu1 %v25_v2, %s154_s13  ;;  %56 = vrot.lane.b32.xlu0 %v23_v3, %s154_s13  ;;  %v37_v14 = vld [vmem:[#allocation2 + $0x79] sm:$0x3f]  ;;  %v36_v15 = vld [vmem:[#allocation2 + $0x71] sm:$0xff] }
  0x16   :  { %64 = vrot.lane.b32.xlu1 %v27_v4, %s154_s13  ;;  %62 = vrot.lane.b32.xlu0 %v26_v5, %s154_s13 }
  0x1a   :  { %68 = vrot.lane.b32.xlu1 %v29_v6, %s154_s13  ;;  %66 = vrot.lane.b32.xlu0 %v28_v7, %s154_s13 }
  0x1e   :  { %72 = vrot.lane.b32.xlu1 %v31_v8, %s154_s13  ;;  %70 = vrot.lane.b32.xlu0 %v30_v9, %s154_s13 }
  0x22   :  { %76 = vrot.lane.b32.xlu1 %v33_v10, %s154_s13  ;;  %74 = vrot.lane.b32.xlu0 %v32_v11, %s154_s13 }
  0x26   :  { %80 = vrot.lane.b32.xlu1 %v35_v12, %s154_s13  ;;  %78 = vrot.lane.b32.xlu0 %v34_v13, %s154_s13 }
  0x2a   :  { %84 = vrot.lane.b32.xlu1 %v37_v14, %s154_s13  ;;  %82 = vrot.lane.b32.xlu0 %v36_v15, %s154_s13 }
  0x80   :  { %v59_v16 = vpop.permute.xlu1 %58  ;;  %v55_v17 = vpop.permute.xlu0 %54 }
  0x81   :  { %106 = vst.msk [vmem:[%s233_s1 + $0x10] sm:$0xff] %vm102_vm0, %v59_v16  ;;  %103 = vst.msk [vmem:[%s233_s1] sm:$0xff] %vm102_vm0, %v55_v17 }
  0x84   :  { %v61_v18 = vpop.permute.xlu1 %60  ;;  %v57_v19 = vpop.permute.xlu0 %56 }
  0x85   :  { %107 = vst.msk [vmem:[%s233_s1 + $0x18] sm:$0x3f] %vm104_vm1, %v61_v18  ;;  %105 = vst.msk [vmem:[%s233_s1 + $0x8] sm:$0x3f] %vm104_vm1, %v57_v19 }
  0x88   :  { %v65_v20 = vpop.permute.xlu1 %64  ;;  %v63_v21 = vpop.permute.xlu0 %62 }
  0x89   :  { %109 = vst.msk [vmem:[%s233_s1 + $0x28] sm:$0x3f] %vm104_vm1, %v65_v20 }
  0x8a   :  { %108 = vst.msk [vmem:[%s233_s1 + $0x20] sm:$0xff] %vm102_vm0, %v63_v21 }
  0x8c   :  { %v69_v22 = vpop.permute.xlu1 %68  ;;  %v67_v23 = vpop.permute.xlu0 %66 }
  0x8d   :  { %111 = vst.msk [vmem:[%s233_s1 + $0x38] sm:$0x3f] %vm104_vm1, %v69_v22 }
  0x8e   :  { %110 = vst.msk [vmem:[%s233_s1 + $0x30] sm:$0xff] %vm102_vm0, %v67_v23 }
  0x90   :  { %v73_v24 = vpop.permute.xlu1 %72  ;;  %v71_v25 = vpop.permute.xlu0 %70 }
  0x91   :  { %113 = vst.msk [vmem:[%s233_s1 + $0x48] sm:$0x3f] %vm104_vm1, %v73_v24 }
  0x92   :  { %112 = vst.msk [vmem:[%s233_s1 + $0x40] sm:$0xff] %vm102_vm0, %v71_v25 }
  0x94   :  { %v77_v26 = vpop.permute.xlu1 %76  ;;  %v75_v27 = vpop.permute.xlu0 %74 }
  0x95   :  { %115 = vst.msk [vmem:[%s233_s1 + $0x58] sm:$0x3f] %vm104_vm1, %v77_v26 }
  0x96   :  { %114 = vst.msk [vmem:[%s233_s1 + $0x50] sm:$0xff] %vm102_vm0, %v75_v27 }
  0x98   :  { %v81_v28 = vpop.permute.xlu1 %80  ;;  %v79_v29 = vpop.permute.xlu0 %78 }
  0x99   :  { %117 = vst.msk [vmem:[%s233_s1 + $0x68] sm:$0x3f] %vm104_vm1, %v81_v28 }
  0x9a   :  { %116 = vst.msk [vmem:[%s233_s1 + $0x60] sm:$0xff] %vm102_vm0, %v79_v29 }
  0x9c   :  { %v85_v30 = vpop.permute.xlu1 %84  ;;  %v83_v31 = vpop.permute.xlu0 %82 }
  0x9d   :  { %119 = vst.msk [vmem:[%s233_s1 + $0x78] sm:$0x3f] %vm104_vm1, %v85_v30 }
  0x9e   :  { %118 = vst.msk [vmem:[%s233_s1 + $0x70] sm:$0xff] %vm102_vm0, %v83_v31 }
  0x9f   :  { %124 = vsyncpa [#allocation3], 1 }

</bundles_post_ra>
